<compile_context>
chip_gen: v7x
topology: tpu7x:2x2x1
jax: 0.10.0
libtpu: 0.0.40
codegen_flags: <defaults>
</compile_context>

<pallas_src>
import functools
import math

import jax
import jax.numpy as jnp
from jax.experimental import pallas as pl
from jax.experimental.pallas import tpu as pltpu

_LANE = 128
_VMEM_BUDGET = 16 * 1024 * 1024   # target for the double-buffered working set
_VMEM_LIMIT = 32 * 1024 * 1024    # scoped VMEM limit (raises v5e's 16 MiB default)


# ----------------------------------------------------------------------------
# Kernels (one per mode so only the operands each mode needs are streamed).
# ----------------------------------------------------------------------------
def _leaky(x, slope):
    return jnp.where(x > 0.0, x, slope * x)


def _real_kernel(slope_ref, re_ref, ore_ref):
    ore_ref[...] = _leaky(re_ref[...], slope_ref[0])


def _cartesian_kernel(slope_ref, re_ref, im_ref, ore_ref, oim_ref):
    s = slope_ref[0]
    ore_ref[...] = _leaky(re_ref[...], s)
    oim_ref[...] = _leaky(im_ref[...], s)


def _modulus_kernel(bias_ref, re_ref, im_ref, ore_ref, oim_ref):
    re = re_ref[...]
    im = im_ref[...]
    r2 = re * re + im * im
    zabs = jnp.sqrt(r2)
    shifted = zabs + bias_ref[0]
    # (zabs + b) / zabs == (zabs + b) * rsqrt(r2); keeps the divide off the VALU.
    scale = jnp.where(shifted > 0.0, shifted * jax.lax.rsqrt(r2), 0.0)
    ore_ref[...] = scale * re
    oim_ref[...] = scale * im


def _cardioid_kernel(re_ref, im_ref, ore_ref, oim_ref):
    re = re_ref[...]
    im = im_ref[...]
    r2 = re * re + im * im
    # cos(angle(z)) = re / |z|, with cos(angle(0)) = 1  (angle(0) == 0).
    cos_ang = jnp.where(r2 > 0.0, re * jax.lax.rsqrt(r2), 1.0)
    factor = 0.5 * (1.0 + cos_ang)
    ore_ref[...] = factor * re
    oim_ref[...] = factor * im


# ----------------------------------------------------------------------------
# Wrapper helpers
# ----------------------------------------------------------------------------
def _choose_block_rows(rows, n_planes):
    """Largest block (multiple of 8 sublanes) s.t. n_planes * 2 buffers fit budget."""
    br = _VMEM_BUDGET // (2 * n_planes * _LANE * 4)   # f32 planes
    br = max(8, (br // 8) * 8)
    return min(rows, br)


def _to_plane(x_flat, n, rows):
    pad = rows * _LANE - n
    if pad:  # rare path; only taken when the flat length is not a multiple of 128
        x_flat = jnp.pad(x_flat, (0, pad))
    return x_flat.reshape(rows, _LANE)


# ----------------------------------------------------------------------------
# Public entry point
# ----------------------------------------------------------------------------
@functools.partial(jax.jit, static_argnames=("mode",))
def complex_relu(z, bias, *, mode="real", negative_slope=0.0):
    """Pallas TPU implementation of ComplexReLU.forward.

    z:    complex64 array of any shape.
    bias: float32 array of shape (1,) (only used by 'modulus'; bias_shape=None case).
    """
    if mode not in ("real", "cartesian", "modulus", "cardioid"):
        raise NotImplementedError(mode)

    orig_shape = z.shape
    n = math.prod(orig_shape) if orig_shape else 1
    if n == 0:
        return z

    rows = pl.cdiv(n, _LANE)
    plane_shape = jax.ShapeDtypeStruct((rows, _LANE), jnp.float32)
    smem = pl.BlockSpec(memory_space=pltpu.SMEM)

    def make_specs(n_planes):
        br = _choose_block_rows(rows, n_planes)
        blk = pl.BlockSpec((br, _LANE), lambda i: (i, 0))
        grid = (pl.cdiv(rows, br),)
        return blk, grid

    cparams = pltpu.CompilerParams(
        dimension_semantics=("parallel",),
        vmem_limit_bytes=_VMEM_LIMIT,
    )

    re = _to_plane(jnp.real(z).astype(jnp.float32).reshape(-1), n, rows)

    if mode == "real":
        # The imaginary plane never touches the kernel (halves DMA traffic here).
        blk, grid = make_specs(n_planes=2)  # 1 input + 1 output plane
        slope = jnp.asarray(negative_slope, jnp.float32).reshape(1)
        ore = pl.pallas_call(
            _real_kernel,
            out_shape=plane_shape,
            grid=grid,
            in_specs=[smem, blk],
            out_specs=blk,
            compiler_params=cparams,
        )(slope, re)
        out_re = ore.reshape(-1)[:n].reshape(orig_shape)
        return jax.lax.complex(out_re, jnp.imag(z).astype(jnp.float32))

    im = _to_plane(jnp.imag(z).astype(jnp.float32).reshape(-1), n, rows)
    blk, grid = make_specs(n_planes=4)  # 2 input + 2 output planes

    if mode == "cartesian":
        scalar = jnp.asarray(negative_slope, jnp.float32).reshape(1)
        kernel = _cartesian_kernel
        in_specs = [smem, blk, blk]
        args = (scalar, re, im)
    elif mode == "modulus":
        # TODO(synk): non-scalar `bias_shape` for 'modulus' is not implemented
        # (scalar bias, i.e. bias_shape=None, is implemented).
        scalar = jnp.asarray(bias, jnp.float32).reshape(1)
        kernel = _modulus_kernel
        in_specs = [smem, blk, blk]
        args = (scalar, re, im)
    else:  # cardioid
        kernel = _cardioid_kernel
        in_specs = [blk, blk]
        args = (re, im)

    ore, oim = pl.pallas_call(
        kernel,
        out_shape=(plane_shape, plane_shape),
        grid=grid,
        in_specs=in_specs,
        out_specs=(blk, blk),
        compiler_params=cparams,
    )(*args)

    out_re = ore.reshape(-1)[:n].reshape(orig_shape)
    out_im = oim.reshape(-1)[:n].reshape(orig_shape)
    return jax.lax.complex(out_re, out_im)


# ----------------------------------------------------------------------------
# Pure-JAX reference (mirrors the PyTorch forward exactly) for verification.
# ----------------------------------------------------------------------------
def _ref_complex_relu(z, bias, mode="real", negative_slope=0.0):
    re, im = jnp.real(z), jnp.imag(z)
    leaky = lambda x: jnp.where(x > 0, x, negative_slope * x)
    if mode == "cartesian":
        return jax.lax.complex(leaky(re), leaky(im))
    if mode == "real":
        return jax.lax.complex(leaky(re), im)
    if mode == "modulus":
        zabs = jnp.sqrt(re * re + im * im)
        return jnp.where(zabs + bias > 0, (zabs + bias) * z / zabs.astype(z.dtype), 0.0)
    if mode == "cardioid":
        return (0.5 * (1.0 + jnp.cos(jnp.angle(z)))).astype(z.dtype) * z
    raise NotImplementedError(mode)


if __name__ == "__main__":
    key = jax.random.PRNGKey(0)

    # Deterministic parameter init, matching nn.Parameter(scale * torch.ones(1))
    # for the modes that own a bias ('modulus'); other modes use bias = 0.
    scale = 1.0
    bias_modulus = jnp.full((1,), scale, dtype=jnp.float32)
    bias_zero = jnp.zeros((1,), dtype=jnp.float32)

    configs = [
        ("real", 0.0, bias_zero),       # module defaults
        ("cartesian", 0.1, bias_zero),
        ("modulus", 0.0, bias_modulus),
        ("cardioid", 0.0, bias_zero),
    ]

    # Shapes exercise: single block, ragged flat length (not multiple of 128),
    # and a multi-block ragged grid (rows > block_rows for the two-plane modes).
    shapes = [(2, 4, 16, 16), (3, 5, 50), (4, 8, 128, 130)]
    for shape in shapes:
        kr, ki = jax.random.split(jax.random.fold_in(key, len(shape) + shape[-1]))
        z = jax.lax.complex(
            jax.random.normal(kr, shape, dtype=jnp.float32),
            jax.random.normal(ki, shape, dtype=jnp.float32),
        )
        for mode, slope, bias in configs:
            out = complex_relu(z, bias, mode=mode, negative_slope=slope)
            jax.block_until_ready(out)
            ref = _ref_complex_relu(z, bias[0], mode=mode, negative_slope=slope)
            assert out.shape == z.shape and out.dtype == jnp.complex64
            assert jnp.allclose(out, ref, atol=1e-5, rtol=5e-5), (
                f"mismatch mode={mode} shape={shape}")

    print("KERNEL_OK")
</pallas_src>

<mosaic_0001>
module attributes {stable_mosaic.version = 11 : i64} {
  func.func @_real_kernel(%arg0: i32, %arg1: memref<1xf32, #tpu.memory_space<smem>>, %arg2: memref<16x128xf32, #tpu.memory_space<vmem>>, %arg3: memref<16x128xf32, #tpu.memory_space<vmem>>) attributes {dimension_semantics = [#tpu.dimension_semantics<parallel>], iteration_bounds = array<i64: 1>, scalar_prefetch = 0 : i64, scratch_operands = 0 : i64, tpu.core_type = #tpu.core_type<tc>, window_params = [{transform_indices = @transform_0, window_bounds = array<i64: 1>}, {transform_indices = @transform_1, window_bounds = array<i64: 16, 128>}, {transform_indices = @transform_2, window_bounds = array<i64: 16, 128>}]} {
    %c0 = arith.constant 0 : index
    %c0_0 = arith.constant 0 : index
    %0 = vector.load %arg2[%c0, %c0_0] : memref<16x128xf32, #tpu.memory_space<vmem>>, vector<16x128xf32>
    %c0_1 = arith.constant 0 : index
    %1 = memref.load %arg1[%c0_1] : memref<1xf32, #tpu.memory_space<smem>>
    %cst = arith.constant 0.000000e+00 : f32
    %2 = vector.broadcast %cst : f32 to vector<16x128xf32>
    %3 = arith.cmpf ogt, %0, %2 : vector<16x128xf32>
    %4 = vector.broadcast %1 : f32 to vector<16x128xf32>
    %5 = arith.mulf %4, %0 : vector<16x128xf32>
    %6 = arith.select %3, %0, %5 : vector<16x128xi1>, vector<16x128xf32>
    %c0_2 = arith.constant 0 : index
    %c0_3 = arith.constant 0 : index
    %7 = vector.load %arg3[%c0_2, %c0_3] : memref<16x128xf32, #tpu.memory_space<vmem>>, vector<16x128xf32>
    tpu.vector_store %arg3[%c0_2, %c0_3], %6 {strides = array<i32>} : memref<16x128xf32, #tpu.memory_space<vmem>>, vector<16x128xf32>,
    return
  }
  func.func @transform_0(%arg0: i32) -> i32 {
    %c0_i32 = arith.constant 0 : i32
    %c0_i32_0 = arith.constant 0 : i32
    return %c0_i32 : i32
  }
  func.func @transform_1(%arg0: i32) -> (i32, i32) {
    %c0_i32 = arith.constant 0 : i32
    %c0_i32_0 = arith.constant 0 : i32
    return %arg0, %c0_i32 : i32, i32
  }
  func.func @transform_2(%arg0: i32) -> (i32, i32) {
    %c0_i32 = arith.constant 0 : i32
    %c0_i32_0 = arith.constant 0 : i32
    return %arg0, %c0_i32 : i32, i32
  }
}

</mosaic_0001>

<bundles_post_ra>
// kernel: custom-call
= control target key start
LH: loop header
LB: loop body
LE: loop exit
PB: predicated region body
PF: predicated region fallthrough
CT: control target
= control target key end

     0   :  { %2 = vsyncpa [#allocation0], 0  ;;  %s61_s0 = inlined_call_operand.hbm [shape: c64[2,4,16,16], index: 0, kind: input, shape index: {}]   ;;  %s62_s1 = inlined_call_operand.vmem [shape: f32[2,4,16,16], index: 1, kind: output, shape index: {}]  }
   0x1   :  { %s3_s8 = sshll.u32 %s62_s1, 4  ;;  %s9_s11 = scalar_lea.hbm %s61_s0, 2048  ;;  %s4_s8 = int_to_ptr.vmem [resolvable:$true] %s3_s8 }
   0x2   :  { %p10_p0 = scmp.ne.s32.totalorder %s61_s0, %s9_s11  ;;  %s11_s16 = scalar_lea.hbm %s61_s0, 4096 }
   0x3   :  { %p12_p1 = scmp.lt.u32.totalorder %s11_s16, %s9_s11  ;;  %p13_p2 = scmp.lt.u32.totalorder %s9_s11, %s61_s0 }
   0x5   :  { %p14_p3 = por %p13_p2, %p12_p1 }
   0x7   :  { %p15_p4 = pnand %p14_p3, %p10_p0 }
   0x9   :  { %18 = shalt.err (!%p15_p4)  }
   0xa   :  { %s19_s1 = scalar_lea.vmem %s4_s8, 2048  ;;  %p24_p6 = scmp.lt.s32.totalorder %s4_s8, %s4_s8 }
   0xb   :  { %p20_p5 = scmp.ne.s32.totalorder %s4_s8, %s19_s1  ;;  %p25_p7 = scmp.lt.s32.totalorder %s19_s1, %s19_s1 }
   0xd   :  { %p26_p8 = por %p25_p7, %p24_p6 }
   0xf   :  { %p27_p9 = pnand %p26_p8, %p20_p5 }
  0x11   :  { %30 = shalt.err (!%p27_p9)  }
  0x12   :  { %6 = dma.hbm_to_vmem [thread:$0]  %s61_s0, 2048, %s4_s8, [#allocation0] }
  0x13   :  { %31 = dma.done.wait [#allocation0], 2048  }
  0x14   :  { %32 = vsyncadd [#allocation0], 4294965248 }
  0x15   :  { %8 = vsyncpa [#allocation0], 1 }

// kernel: custom-call.1
= control target key start
LH: loop header
LB: loop body
LE: loop exit
PB: predicated region body
PF: predicated region fallthrough
CT: control target
= control target key end

     0   :  { %s59_s0 = inlined_call_operand.hbm [shape: c64[2,4,16,16], index: 0, kind: input, shape index: {}]   ;;  %s60_s1 = inlined_call_operand.vmem [shape: f32[2,4,16,16], index: 1, kind: output, shape index: {}]  }
   0x1   :  { %s2_s8 = scalar_lea.hbm %s59_s0, 2048 }
   0x2   :  { %3 = vsyncpa [#allocation0], 0  ;;  %s4_s11 = sshll.u32 %s60_s1, 4  ;;  %s34_s14 = scalar_lea.hbm %s59_s0, 4096  ;;  %s5_s11 = int_to_ptr.vmem [resolvable:$true] %s4_s11 }
   0x3   :  { %p11_p0 = scmp.ne.s32.totalorder %s2_s8, %s34_s14  ;;  %p13_p1 = scmp.lt.u32.totalorder %s2_s8, %s59_s0 }
   0x4   :  { %p14_p2 = scmp.lt.u32.totalorder %s34_s14, %s34_s14  ;;  %p16_p4 = scmp.lt.u32.totalorder %s34_s14, %s2_s8 }
   0x6   :  { %p15_p3 = por %p14_p2, %p13_p1 }
   0x8   :  { %p17_p5 = por %p16_p4, %p15_p3 }
   0xa   :  { %p18_p6 = pnand %p17_p5, %p11_p0 }
   0xc   :  { %21 = shalt.err (!%p18_p6)  }
   0xd   :  { %s22_s17 = scalar_lea.vmem %s5_s11, 2048  ;;  %p27_p8 = scmp.lt.s32.totalorder %s5_s11, %s5_s11 }
   0xe   :  { %p23_p7 = scmp.ne.s32.totalorder %s5_s11, %s22_s17  ;;  %p28_p9 = scmp.lt.s32.totalorder %s22_s17, %s22_s17 }
  0x10   :  { %p29_p10 = por %p28_p9, %p27_p8 }
  0x12   :  { %p30_p11 = pnand %p29_p10, %p23_p7 }
  0x14   :  { %33 = shalt.err (!%p30_p11)  }
  0x15   :  { %7 = dma.hbm_to_vmem [thread:$0]  %s2_s8, 2048, %s5_s11, [#allocation0] }
  0x16   :  { %35 = dma.done.wait [#allocation0], 2048  }
  0x17   :  { %36 = vsyncadd [#allocation0], 4294965248 }
  0x18   :  { %9 = vsyncpa [#allocation0], 1 }

// kernel: custom-call.2
= control target key start
LH: loop header
LB: loop body
LE: loop exit
PB: predicated region body
PF: predicated region fallthrough
CT: control target
= control target key end

     0   :  { %s126_s0 = inlined_call_operand.vmem [shape: f32[2,4,16,16], index: 0, kind: input, shape index: {}]   ;;  %s127_s1 = inlined_call_operand.vmem [shape: f32[2,4,16,16], index: 1, kind: input, shape index: {}]   ;;  %s128_s2 = inlined_call_operand.hbm [shape: c64[2,4,16,16], index: 2, kind: output, shape index: {}]  }
   0x1   :  { %s87_s11 = scalar_lea.hbm %s128_s2, 2048 }
   0x2   :  { %4 = vsyncpa [#allocation0], 0  ;;  %s5_s14 = sshll.u32 %s126_s0, 4  ;;  %s6_s14 = int_to_ptr.vmem [resolvable:$true] %s5_s14 }
   0x3   :  { %s18_s15 = scalar_lea.vmem %s6_s14, 2048  ;;  %p23_p1 = scmp.lt.s32.totalorder %s6_s14, %s6_s14 }
   0x4   :  { %p19_p0 = scmp.ne.s32.totalorder %s6_s14, %s18_s15  ;;  %p24_p2 = scmp.lt.s32.totalorder %s18_s15, %s18_s15 }
   0x6   :  { %p25_p3 = por %p24_p2, %p23_p1 }
   0x8   :  { %p26_p4 = pnand %p25_p3, %p19_p0 }
   0xa   :  { %29 = shalt.err (!%p26_p4)  }
   0xb   :  { %p31_p5 = scmp.ne.s32.totalorder %s128_s2, %s87_s11  ;;  %s32_s0 = scalar_lea.hbm %s128_s2, 4096 }
   0xc   :  { %p33_p6 = scmp.lt.u32.totalorder %s32_s0, %s87_s11  ;;  %p34_p7 = scmp.lt.u32.totalorder %s87_s11, %s128_s2 }
   0xe   :  { %p35_p8 = por %p34_p7, %p33_p6 }
  0x10   :  { %p36_p9 = pnand %p35_p8, %p31_p5 }
  0x12   :  { %39 = shalt.err (!%p36_p9)  }
  0x13   :  { %8 = dma.vmem_to_hbm [thread:$0]  %s6_s14, 2048, %s128_s2, [#allocation0] }
  0x14   :  { %65 = dma.done.wait [#allocation0], 2048  }
  0x15   :  { %66 = vsyncadd [#allocation0], 4294965248 }
  0x16   :  { %10 = vsyncpa [#allocation0], 1 }
  0x17   :  { %11 = vsyncpa [#allocation1], 0  ;;  %s12_s28 = sshll.u32 %s127_s1, 4  ;;  %s13_s28 = int_to_ptr.vmem [resolvable:$true] %s12_s28 }
  0x18   :  { %s40_s29 = scalar_lea.vmem %s13_s28, 2048  ;;  %p45_p11 = scmp.lt.s32.totalorder %s13_s28, %s13_s28 }
  0x19   :  { %p41_p10 = scmp.ne.s32.totalorder %s13_s28, %s40_s29  ;;  %p46_p12 = scmp.lt.s32.totalorder %s40_s29, %s40_s29 }
  0x1b   :  { %p47_p13 = por %p46_p12, %p45_p11 }
  0x1d   :  { %p48_p0 = pnand %p47_p13, %p41_p10 }
  0x1f   :  { %51 = shalt.err (!%p48_p0)  }
  0x20   :  { %p53_p1 = scmp.ne.s32.totalorder %s87_s11, %s32_s0  ;;  %p56_p2 = scmp.lt.u32.totalorder %s32_s0, %s32_s0 }
  0x22   :  { %p57_p3 = por %p56_p2, %p34_p7 }
  0x24   :  { %p59_p4 = por %p57_p3, %p33_p6 }
  0x26   :  { %p60_p5 = pnand %p59_p4, %p53_p1 }
  0x28   :  { %63 = shalt.err (!%p60_p5)  }
  0x29   :  { %15 = dma.vmem_to_hbm [thread:$0]  %s13_s28, 2048, %s87_s11, [#allocation1] }
  0x2a   :  { %67 = dma.done.wait [#allocation1], 2048  }
  0x2b   :  { %68 = vsyncadd [#allocation1], 4294965248 }
  0x2c   :  { %17 = vsyncpa [#allocation1], 1 }

// kernel: complex_relu.1
= control target key start
LH: loop header
LB: loop body
LE: loop exit
PB: predicated region body
PF: predicated region fallthrough
CT: control target
= control target key end

     0   :  { %s58_s0 = inlined_call_operand.<no memory space> [shape: f32[1], index: 0, kind: input, shape index: {}]   ;;  %s59_s1 = inlined_call_operand.vmem [shape: f32[16,128], index: 1, kind: input, shape index: {}]   ;;  %s60_s2 = inlined_call_operand.vmem [shape: f32[16,128], index: 2, kind: output, shape index: {}]  }
   0x1   :  { %v12_v0 = vld [vmem:[%s59_s1] sm:$0xff]  ;;  %v17_v1 = vstv %s58_s0  ;;  %v13_v2 = vld [vmem:[%s59_s1 + $0x8] sm:$0xff] }
   0x2   :  { %vm15_vm0 = vcmp.gt.f32.partialorder %v12_v0, 0.0  ;;  %v18_v3 = vmul.f32 %v17_v1, %v12_v0  ;;  %vm16_vm1 = vcmp.gt.f32.partialorder %v13_v2, 0.0  ;;  %v19_v4 = vmul.f32 %v17_v1, %v13_v2 }
   0x4   :  { %v20_v5 = vsel %vm15_vm0, %v12_v0, %v18_v3  ;;  %v21_v6 = vsel %vm16_vm1, %v13_v2, %v19_v4 }
   0x5   :  { %22 = vst [vmem:[%s60_s2] sm:$0xff] %v20_v5  ;;  %23 = vst [vmem:[%s60_s2 + $0x8] sm:$0xff] %v21_v6 }

</bundles_post_ra>
